<compile_context>
chip_gen: v7x
topology: tpu7x:2x2x1
jax: 0.10.0
libtpu: 0.0.40
codegen_flags: <defaults>
</compile_context>

<pallas_src>
import functools

import jax
import jax.numpy as jnp
from jax.experimental import pallas as pl
from jax.experimental.pallas import tpu as pltpu

_MIB = 1024 * 1024
_MAX_UNROLL_CHUNKS = 64  # cap on manually-unrolled 128-lane chunk adds


def _round_up(x, m):
    return ((x + m - 1) // m) * m


def _round_down(x, m):
    return (x // m) * m


def _vmem_capacity_bytes():
    """Physical VMEM per TensorCore; conservative fallback if unqueryable."""
    try:
        cap = getattr(pltpu.get_tpu_info(), "vmem_capacity_bytes", None)
        if cap:
            return int(cap)
    except Exception:
        pass
    return 64 * _MIB  # v7x-sized fallback; safe on every generation.


def _row_align(dtype):
    """Sublane packing: 8 rows for 4-byte, 16 for 2-byte, 32 for 1-byte."""
    return max(8, 32 // jnp.dtype(dtype).itemsize)


def _gap_single_pass_kernel(x_ref, o_ref, *, inv_hw, hw, lane_chunks):
    """Whole reduction axis in one block: sum each row, scale, store once."""
    if lane_chunks > 0:
        # Elementwise vreg adds over 128-lane chunks (VALU, co-issues with vld),
        # then one cross-lane reduce (XLU) per tile.
        acc = x_ref[:, 0:128].astype(jnp.float32)
        for c in range(1, lane_chunks):
            acc = acc + x_ref[:, c * 128:(c + 1) * 128].astype(jnp.float32)
        total = jnp.sum(acc, axis=-1, keepdims=True)
        rem_start = lane_chunks * 128
        if rem_start < hw:
            total = total + jnp.sum(
                x_ref[:, rem_start:hw], axis=-1, keepdims=True,
                dtype=jnp.float32)
    else:
        total = jnp.sum(x_ref[...], axis=-1, keepdims=True, dtype=jnp.float32)
    o_ref[...] = (total * inv_hw).astype(o_ref.dtype)


def _gap_tiled_kernel(x_ref, o_ref, acc_ref, *, inv_hw, lane_chunks):
    """Reduction axis tiled on grid axis 1; (tile_r, 128) f32 accumulator."""
    k = pl.program_id(1)

    @pl.when(k == 0)
    def _init():
        acc_ref[...] = jnp.zeros_like(acc_ref)

    # Per-step work is pure vld + VALU adds; no per-step cross-lane reduce.
    acc = acc_ref[...]
    for c in range(lane_chunks):
        acc = acc + x_ref[:, c * 128:(c + 1) * 128].astype(jnp.float32)
    acc_ref[...] = acc

    @pl.when(k == pl.num_programs(1) - 1)
    def _finalize():
        total = jnp.sum(acc_ref[...], axis=-1, keepdims=True)
        o_ref[...] = (total * inv_hw).astype(o_ref.dtype)


def _avg_pool_with_mean_pallas(x):
    N, C, H, W = x.shape
    R, HW = N * C, H * W
    itemsize = jnp.dtype(x.dtype).itemsize
    row_align = _row_align(x.dtype)

    x2 = x.reshape(R, HW)          # layout-only reshape: rows=(n,c), lanes=HW
    inv_hw = 1.0 / float(HW)

    vmem_cap = _vmem_capacity_bytes()
    # Per input buffer (pipeline double-buffers it): big enough to amortize the
    # ~0.35 us per-grid-step overhead, small enough for v7x's 64 MiB VMEM.
    per_buf = min(16 * _MIB, vmem_cap // 5)
    vmem_limit = min((vmem_cap // 4) * 3, 96 * _MIB)

    R_aligned = _round_up(R, row_align)
    # Keep the (parallel) row axis populated: >=8 programs when R allows
    # (megacore sharding + pipeline warmup), else >=2, else 1.
    if R_aligned >= 8 * row_align:
        min_row_programs = 8
    elif R_aligned >= 2 * row_align:
        min_row_programs = 2
    else:
        min_row_programs = 1
    cap_parallel = max(row_align,
                       _round_down(R_aligned // min_row_programs, row_align))

    cost = pl.CostEstimate(
        flops=R * HW,
        transcendentals=0,
        bytes_accessed=R * HW * itemsize + R * itemsize,
    )

    rows_in_budget = per_buf // max(1, HW * itemsize)

    if rows_in_budget >= row_align:
        # ---- Common case: whole reduction axis fits in one lane block. ----
        tile_r = min(R_aligned, cap_parallel,
                     _round_down(rows_in_budget, row_align))
        tile_r = max(tile_r, row_align)
        lane_chunks = HW // 128
        if lane_chunks > _MAX_UNROLL_CHUNKS:
            lane_chunks = 0  # huge rows: let the compiler lower the reduce

        out = pl.pallas_call(
            functools.partial(_gap_single_pass_kernel, inv_hw=inv_hw, hw=HW,
                              lane_chunks=lane_chunks),
            out_shape=jax.ShapeDtypeStruct((R, 1), x.dtype),
            grid_spec=pltpu.PrefetchScalarGridSpec(
                num_scalar_prefetch=0,
                grid=(pl.cdiv(R, tile_r),),
                in_specs=[pl.BlockSpec((tile_r, HW), lambda i: (i, 0))],
                out_specs=pl.BlockSpec((tile_r, 1), lambda i: (i, 0)),
            ),
            compiler_params=pltpu.CompilerParams(
                dimension_semantics=("parallel",),
                vmem_limit_bytes=vmem_limit,
            ),
            cost_estimate=cost,
        )(x2)
    else:
        # ---- Rare case: enormous spatial dim; tile the reduction axis. ----
        tile_r = _round_up(max(row_align, min(cap_parallel, 64)), row_align)
        lane_budget = max(128, per_buf // (tile_r * itemsize))
        tile_hw = min(_round_down(lane_budget, 128),
                      _round_up(HW, 128),
                      128 * _MAX_UNROLL_CHUNKS)
        HW_pad = _round_up(HW, tile_hw)
        if HW_pad != HW:
            # Zero lanes do not change the per-row sum; the mean still divides
            # by the true H*W.
            x2 = jnp.pad(x2, ((0, 0), (0, HW_pad - HW)))

        out = pl.pallas_call(
            functools.partial(_gap_tiled_kernel, inv_hw=inv_hw,
                              lane_chunks=tile_hw // 128),
            out_shape=jax.ShapeDtypeStruct((R, 1), x.dtype),
            grid_spec=pltpu.PrefetchScalarGridSpec(
                num_scalar_prefetch=0,
                grid=(pl.cdiv(R, tile_r), HW_pad // tile_hw),
                in_specs=[pl.BlockSpec((tile_r, tile_hw),
                                       lambda i, k: (i, k))],
                out_specs=pl.BlockSpec((tile_r, 1), lambda i, k: (i, 0)),
                scratch_shapes=[pltpu.VMEM((tile_r, 128), jnp.float32)],
            ),
            compiler_params=pltpu.CompilerParams(
                dimension_semantics=("parallel", "arbitrary"),
                vmem_limit_bytes=vmem_limit,
            ),
            cost_estimate=cost,
        )(x2)

    return out.reshape(N, C)


def avg_pool_with_mean(x, *, min_pallas_elems=1 << 15):
    """Global spatial mean: (N, C, H, W) -> (N, C).

    Tiny tensors skip Pallas (launch overhead dwarfs HBM time); everything
    else uses the tiled Pallas reduction kernel.
    """
    if x.ndim != 4:
        raise ValueError(f"expected NCHW input, got shape {x.shape}")
    if x.size < min_pallas_elems:
        return jnp.mean(x, axis=(2, 3))
    return _avg_pool_with_mean_pallas(x)


if __name__ == "__main__":
    key = jax.random.PRNGKey(0)

    # Primary check (128-aligned spatial dim), forcing the Pallas path.
    N, C, H, W = 2, 4, 16, 16
    x = jax.random.normal(key, (N, C, H, W), dtype=jnp.float32)
    out = jax.block_until_ready(avg_pool_with_mean(x, min_pallas_elems=0))
    ref = jnp.mean(x, axis=(2, 3))
    assert out.shape == (N, C)
    assert jnp.allclose(out, ref, atol=1e-6, rtol=1e-6)

    # Ragged spatial dim (classic 7x7 GAP): full-dim lane block, no padding.
    x2 = jax.random.normal(jax.random.PRNGKey(1), (2, 4, 7, 7),
                           dtype=jnp.float32)
    out2 = jax.block_until_ready(avg_pool_with_mean(x2, min_pallas_elems=0))
    ref2 = jnp.mean(x2, axis=(2, 3))
    assert jnp.allclose(out2, ref2, atol=1e-6, rtol=1e-6)

    print("KERNEL_OK")
</pallas_src>

<mosaic_0001>
module attributes {stable_mosaic.version = 11 : i64} {
  func.func @_gap_single_pass_kernel(%arg0: i32, %arg1: memref<8x256xf32, #tpu.memory_space<vmem>>, %arg2: memref<8x1xf32, #tpu.memory_space<vmem>>) attributes {dimension_semantics = [#tpu.dimension_semantics<parallel>], iteration_bounds = array<i64: 1>, scalar_prefetch = 0 : i64, scratch_operands = 0 : i64, tpu.core_type = #tpu.core_type<tc>, window_params = [{transform_indices = @transform_0, window_bounds = array<i64: 8, 256>}, {transform_indices = @transform_1, window_bounds = array<i64: 8, 1>}]} {
    %c0 = arith.constant 0 : index
    %c0_0 = arith.constant 0 : index
    %0 = vector.load %arg1[%c0, %c0_0] : memref<8x256xf32, #tpu.memory_space<vmem>>, vector<8x128xf32>
    %c0_1 = arith.constant 0 : index
    %c128 = arith.constant 128 : index
    %1 = vector.load %arg1[%c0_1, %c128] : memref<8x256xf32, #tpu.memory_space<vmem>>, vector<8x128xf32>
    %2 = arith.addf %0, %1 : vector<8x128xf32>
    %cst = arith.constant dense<0.000000e+00> : vector<8xf32>
    %3 = vector.multi_reduction <add>, %2, %cst [1] : vector<8x128xf32> to vector<8xf32>
    %4 = vector.shape_cast %3 : vector<8xf32> to vector<8x1xf32>
    %cst_2 = arith.constant 3.906250e-03 : f32
    %5 = vector.broadcast %cst_2 : f32 to vector<8x1xf32>
    %6 = arith.mulf %4, %5 : vector<8x1xf32>
    %c0_3 = arith.constant 0 : index
    %c0_4 = arith.constant 0 : index
    %7 = vector.load %arg2[%c0_3, %c0_4] : memref<8x1xf32, #tpu.memory_space<vmem>>, vector<8x1xf32>
    tpu.vector_store %arg2[%c0_3, %c0_4], %6 {strides = array<i32>} : memref<8x1xf32, #tpu.memory_space<vmem>>, vector<8x1xf32>,
    return
  }
  func.func @transform_0(%arg0: i32) -> (i32, i32) {
    %c0_i32 = arith.constant 0 : i32
    %c0_i32_0 = arith.constant 0 : i32
    return %arg0, %c0_i32 : i32, i32
  }
  func.func @transform_1(%arg0: i32) -> (i32, i32) {
    %c0_i32 = arith.constant 0 : i32
    %c0_i32_0 = arith.constant 0 : i32
    return %arg0, %c0_i32 : i32, i32
  }
}

</mosaic_0001>

<bundles_post_ra>
// kernel: tpu_custom_call.1
= control target key start
LH: loop header
LB: loop body
LE: loop exit
PB: predicated region body
PF: predicated region fallthrough
CT: control target
= control target key end

     0   :  { %6 = vsyncpa [#allocation3], 0  ;;  %s58_s6 = smov [#allocation2]   ;;  %s84_s0 = inlined_call_operand.hbm [shape: f32[8,256], index: 0, kind: input, shape index: {}]   ;;  %s85_s1 = inlined_call_operand.vmem [shape: f32[8,1], index: 1, kind: output, shape index: {}]  }
   0x1   :  { %s13_s7 = sshll.u32 %s58_s6, 4  ;;  %s34_s10 = scalar_lea.hbm %s84_s0, 256  ;;  %s14_s7 = int_to_ptr.vmem [resolvable:$true] %s13_s7 }
   0x2   :  { %p35_p0 = scmp.ne.s32.totalorder %s84_s0, %s34_s10  ;;  %p38_p1 = scmp.lt.u32.totalorder %s34_s10, %s84_s0 }
   0x4   :  { %p40_p2 = pnand %p38_p1, %p35_p0 }
   0x6   :  { %43 = shalt.err (!%p40_p2)
}
   0x7   :  { %s44_s15 = scalar_lea.vmem %s14_s7, 256  ;;  %p49_p4 = scmp.lt.s32.totalorder %s14_s7, %s14_s7 }
   0x8   :  { %p45_p3 = scmp.ne.s32.totalorder %s14_s7, %s44_s15  ;;  %p50_p5 = scmp.lt.s32.totalorder %s44_s15, %s44_s15 }
   0xa   :  { %p51_p6 = por %p50_p5, %p49_p4 }
   0xc   :  { %p52_p7 = pnand %p51_p6, %p45_p3 }
   0xe   :  { %55 = shalt.err (!%p52_p7)
}
   0xf   :  { %16 = dma.hbm_to_vmem [thread:$0]  %s84_s0, 256, %s14_s7, [#allocation3]  }
  0x10   :  { %56 = dma.done.wait [#allocation3], 256  }
  0x11   :  { %57 = vsyncadd [#allocation3], 4294967040  ;;  %v20_v0 = vld [vmem:[#allocation2] sm:$0xff]  ;;  %v21_v1 = vld [vmem:[#allocation2 + $0x8] sm:$0xff]  ;;  %vm26_vm0 = vcmask 7168  }
  0x12   :  { %v22_v2 = vadd.f32 %v21_v1, %v20_v0 }
  0x14   :  { %23 = vadd.xlane.f32.xlu0 %v22_v2 }
  0xa1   :  { %v24_v3 = vpop.xlane.xlu0 %23 }
  0xa2   :  { %v25_v4 = vmul.f32 0.00390625, %v24_v3 }
  0xa4   :  { %27 = vst.msk [vmem:[%s85_s1] sm:$0xff] %vm26_vm0, %v25_v4 }
  0xa5   :  { %32 = vsyncpa [#allocation3], 1 }

</bundles_post_ra>
